<compile_context>
chip_gen: v5e
topology: v5e:2x2
jax: 0.10.0
libtpu: 0.0.40
codegen_flags: <defaults>
</compile_context>

<pallas_src>
import functools

import jax
import jax.numpy as jnp
import numpy as np
from jax.experimental import pallas as pl
from jax.experimental.pallas import tpu as pltpu


def _one_conv_kernel(x_ref, w_ref, b_ref, out_ref, slab_ref, col_ref, *,
                     N, Cin, H, W, G, L):
    # x_ref   : (N, Cin, H*W)          NCHW input, spatial flattened (lane-dense)
    # w_ref   : (Cout, 9*G)    bf16    weights, K ordered (kh, kw, c), c padded to G
    # b_ref   : (Cout, 1)      f32     bias (broadcast along lanes)
    # out_ref : (N, Cin+Cout, H*W)     [ x | relu(conv3x3(x)) ] along channels
    # slab_ref: (N*G, L+H*W+W+1) bf16  zero-halo'd flat input (VMEM scratch)
    # col_ref : (9*G, N*H*W)   bf16    im2col operand          (VMEM scratch)
    HW = H * W
    base = L - (W + 1)                    # lane offset of tap (kh=0, kw=0)

    # ---- zero ONLY what is ever read (not the whole slab) ----
    halo = jnp.zeros((N * G, W + 1), dtype=slab_ref.dtype)
    slab_ref[:, base:L] = halo                                  # left halo strip
    slab_ref[:, L + HW:L + HW + W + 1] = halo                   # right halo strip
    for n in range(N):
        r0 = n * G
        # interior x store: lane offset 128-aligned -> unmasked vst
        slab_ref[r0:r0 + Cin, L:L + HW] = x_ref[n].astype(slab_ref.dtype)
        if G > Cin:
            # sublane-padding rows: zero interior so tap stores carry the
            # K-padding zeros for free (and col never sees uninitialized VMEM)
            slab_ref[r0 + Cin:r0 + G, L:L + HW] = jnp.zeros(
                (G - Cin, HW), dtype=slab_ref.dtype)

    # ---- lane masks killing row-wrap columns for kw = 0 / 2 taps ----
    pw = jax.lax.broadcasted_iota(jnp.int32, (G, HW), 1) % W
    not_left = pw != 0
    not_right = pw != (W - 1)
    zeros_tap = jnp.zeros((G, HW), dtype=col_ref.dtype)

    # ---- build im2col: row (kh*3+kw)*G + c, lane n*HW + p ----
    # Tap (kh,kw) at output position p lives at slab[base + kh*W + kw + p];
    # halo zeros + edge masks reproduce conv pad=1 exactly.
    for kh in range(3):
        for kw in range(3):
            t = kh * 3 + kw
            off = base + kh * W + kw
            for n in range(N):
                tap = slab_ref[n * G:(n + 1) * G, off:off + HW]
                if kw == 0:
                    tap = jnp.where(not_left, tap, zeros_tap)
                elif kw == 2:
                    tap = jnp.where(not_right, tap, zeros_tap)
                # full-height, sublane-aligned group store (no straddling)
                col_ref[t * G:(t + 1) * G, n * HW:(n + 1) * HW] = tap

    # ---- single fused-K MXU matmul (bf16 x bf16 -> f32) + bias + ReLU ----
    acc = jnp.dot(w_ref[...], col_ref[...], preferred_element_type=jnp.float32)
    acc = jnp.maximum(acc + b_ref[...], 0.0)                    # (Cout, N*HW)

    # ---- channel concat via two direct stores per image (no temp) ----
    for n in range(N):
        out_ref[n, :Cin, :] = x_ref[n]                          # pass-through
        out_ref[n, Cin:, :] = acc[:, n * HW:(n + 1) * HW].astype(out_ref.dtype)


def one_conv_forward(x_nchw, weight_oihw, bias):
    """Equivalent of one_conv.forward: cat((x, relu(conv3x3(x, pad=1))), dim=1)."""
    N, Cin, H, W = x_nchw.shape
    Cout = weight_oihw.shape[0]
    HW = H * W
    G = ((Cin + 7) // 8) * 8                        # sublane-padded channel group
    L = max(128, ((W + 1 + 127) // 128) * 128)      # lane-aligned interior offset
    K = 9 * G

    # Free (contiguous) host-side reshapes — no layout transposes of x, no pad.
    x_flat = x_nchw.reshape(N, Cin, HW)
    # (Cout,Cin,3,3) -> (Cout,3,3,Cin) -> zero-pad Cin->G -> (Cout, 9*G) bf16.
    w_t = jnp.transpose(weight_oihw, (0, 2, 3, 1))
    w_pad = jnp.pad(w_t, ((0, 0), (0, 0), (0, 0), (0, G - Cin)))
    w2d = w_pad.reshape(Cout, K).astype(jnp.bfloat16)
    b2d = bias.reshape(Cout, 1).astype(jnp.float32)

    kernel = functools.partial(_one_conv_kernel,
                               N=N, Cin=Cin, H=H, W=W, G=G, L=L)

    # NOTE(v7x, production sizes): add an H-tile grid axis with a 1-row halo as
    # the "parallel" axis and size tiles for 64 MiB VMEM (vmem_limit_bytes);
    # at this toy size everything fits comfortably in one step.
    out_flat = pl.pallas_call(
        kernel,
        out_shape=jax.ShapeDtypeStruct((N, Cin + Cout, HW), x_nchw.dtype),
        grid_spec=pltpu.PrefetchScalarGridSpec(
            num_scalar_prefetch=0,
            grid=(1,),
            in_specs=[
                pl.BlockSpec((N, Cin, HW), lambda i: (0, 0, 0)),
                pl.BlockSpec((Cout, K), lambda i: (0, 0)),
                pl.BlockSpec((Cout, 1), lambda i: (0, 0)),
            ],
            out_specs=pl.BlockSpec((N, Cin + Cout, HW), lambda i: (0, 0, 0)),
            scratch_shapes=[
                pltpu.VMEM((N * G, L + HW + W + 1), jnp.bfloat16),  # halo slab
                pltpu.VMEM((K, N * HW), jnp.bfloat16),              # im2col
            ],
        ),
        compiler_params=pltpu.CompilerParams(
            dimension_semantics=("arbitrary",),
        ),
    )(x_flat, w2d, b2d)

    # Free reshape back to NCHW.
    return out_flat.reshape(N, Cin + Cout, H, W)


if __name__ == "__main__":
    # Small deterministic setup: batch=2, in_channels=4, growth_rate=8, 16x16.
    N, Cin, H, W = 2, 4, 16, 16
    Cout = 8  # growth_rate
    k = 3

    key = jax.random.PRNGKey(0)
    kx, kw_, kb = jax.random.split(key, 3)
    x = jax.random.normal(kx, (N, Cin, H, W), dtype=jnp.float32)
    fan_in = Cin * k * k
    bound = 1.0 / np.sqrt(fan_in)
    weight = jax.random.uniform(kw_, (Cout, Cin, k, k), jnp.float32, -bound, bound)
    bias = jax.random.uniform(kb, (Cout,), jnp.float32, -bound, bound)

    out = one_conv_forward(x, weight, bias)
    out = jax.block_until_ready(out)

    # Reference: same conv semantics as nn.Conv2d(pad=1)+ReLU+cat.  The kernel
    # feeds the MXU bf16 operands (f32 accumulation), so compare against the
    # conv of the bf16-rounded operands (products are exact in f32).
    xq = x.astype(jnp.bfloat16).astype(jnp.float32)
    wq = weight.astype(jnp.bfloat16).astype(jnp.float32)
    ref_conv = jax.lax.conv_general_dilated(
        xq, wq, window_strides=(1, 1), padding=((1, 1), (1, 1)),
        dimension_numbers=("NCHW", "OIHW", "NCHW"),
        precision=jax.lax.Precision.HIGHEST,
    ) + bias[None, :, None, None]
    ref = jnp.concatenate([x, jnp.maximum(ref_conv, 0.0)], axis=1)
    np.testing.assert_allclose(np.asarray(out), np.asarray(ref),
                               atol=1e-4, rtol=1e-4)

    assert out.shape == (N, Cin + Cout, H, W)
    print("KERNEL_OK")
</pallas_src>

<mosaic_0001>
module attributes {stable_mosaic.version = 11 : i64} {
  func.func @_one_conv_kernel(%arg0: i32, %arg1: memref<2x4x256xf32, #tpu.memory_space<vmem>>, %arg2: memref<8x72xbf16, #tpu.memory_space<vmem>>, %arg3: memref<8x1xf32, #tpu.memory_space<vmem>>, %arg4: memref<2x12x256xf32, #tpu.memory_space<vmem>>, %arg5: memref<16x401xbf16, #tpu.memory_space<vmem>>, %arg6: memref<72x512xbf16, #tpu.memory_space<vmem>>) attributes {dimension_semantics = [#tpu.dimension_semantics<arbitrary>], iteration_bounds = array<i64: 1>, scalar_prefetch = 0 : i64, scratch_operands = 2 : i64, tpu.core_type = #tpu.core_type<tc>, window_params = [{pipeline_mode = #tpu.pipeline_mode<synchronous>, transform_indices = @transform_0, window_bounds = array<i64: 2, 4, 256>}, {pipeline_mode = #tpu.pipeline_mode<synchronous>, transform_indices = @transform_1, window_bounds = array<i64: 8, 72>}, {pipeline_mode = #tpu.pipeline_mode<synchronous>, transform_indices = @transform_2, window_bounds = array<i64: 8, 1>}, {pipeline_mode = #tpu.pipeline_mode<synchronous>, transform_indices = @transform_3, window_bounds = array<i64: 2, 12, 256>}]} {
    %cst = arith.constant 0.000000e+00 : bf16
    %0 = vector.broadcast %cst : bf16 to vector<16x17xbf16>
    %c0 = arith.constant 0 : index
    %c111 = arith.constant 111 : index
    %1 = vector.load %arg5[%c0, %c111] : memref<16x401xbf16, #tpu.memory_space<vmem>>, vector<16x17xbf16>
    tpu.vector_store %arg5[%c0, %c111], %0 {strides = array<i32>} : memref<16x401xbf16, #tpu.memory_space<vmem>>, vector<16x17xbf16>,
    %c0_0 = arith.constant 0 : index
    %c384 = arith.constant 384 : index
    %2 = vector.load %arg5[%c0_0, %c384] : memref<16x401xbf16, #tpu.memory_space<vmem>>, vector<16x17xbf16>
    tpu.vector_store %arg5[%c0_0, %c384], %0 {strides = array<i32>} : memref<16x401xbf16, #tpu.memory_space<vmem>>, vector<16x17xbf16>,
    %c0_1 = arith.constant 0 : index
    %c0_2 = arith.constant 0 : index
    %c0_3 = arith.constant 0 : index
    %3 = vector.load %arg1[%c0_1, %c0_2, %c0_3] : memref<2x4x256xf32, #tpu.memory_space<vmem>>, vector<1x4x256xf32>
    %4 = vector.shape_cast %3 : vector<1x4x256xf32> to vector<4x256xf32>
    %5 = arith.truncf %4 : vector<4x256xf32> to vector<4x256xbf16>
    %c0_4 = arith.constant 0 : index
    %c128 = arith.constant 128 : index
    %6 = vector.load %arg5[%c0_4, %c128] : memref<16x401xbf16, #tpu.memory_space<vmem>>, vector<4x256xbf16>
    tpu.vector_store %arg5[%c0_4, %c128], %5 {strides = array<i32>} : memref<16x401xbf16, #tpu.memory_space<vmem>>, vector<4x256xbf16>,
    %cst_5 = arith.constant 0.000000e+00 : bf16
    %7 = vector.broadcast %cst_5 : bf16 to vector<4x256xbf16>
    %c4 = arith.constant 4 : index
    %c128_6 = arith.constant 128 : index
    %8 = vector.load %arg5[%c4, %c128_6] : memref<16x401xbf16, #tpu.memory_space<vmem>>, vector<4x256xbf16>
    tpu.vector_store %arg5[%c4, %c128_6], %7 {strides = array<i32>} : memref<16x401xbf16, #tpu.memory_space<vmem>>, vector<4x256xbf16>,
    %c1 = arith.constant 1 : index
    %c0_7 = arith.constant 0 : index
    %c0_8 = arith.constant 0 : index
    %9 = vector.load %arg1[%c1, %c0_7, %c0_8] : memref<2x4x256xf32, #tpu.memory_space<vmem>>, vector<1x4x256xf32>
    %10 = vector.shape_cast %9 : vector<1x4x256xf32> to vector<4x256xf32>
    %11 = arith.truncf %10 : vector<4x256xf32> to vector<4x256xbf16>
    %c8 = arith.constant 8 : index
    %c128_9 = arith.constant 128 : index
    %12 = vector.load %arg5[%c8, %c128_9] : memref<16x401xbf16, #tpu.memory_space<vmem>>, vector<4x256xbf16>
    tpu.vector_store %arg5[%c8, %c128_9], %11 {strides = array<i32>} : memref<16x401xbf16, #tpu.memory_space<vmem>>, vector<4x256xbf16>,
    %cst_10 = arith.constant 0.000000e+00 : bf16
    %13 = vector.broadcast %cst_10 : bf16 to vector<4x256xbf16>
    %c12 = arith.constant 12 : index
    %c128_11 = arith.constant 128 : index
    %14 = vector.load %arg5[%c12, %c128_11] : memref<16x401xbf16, #tpu.memory_space<vmem>>, vector<4x256xbf16>
    tpu.vector_store %arg5[%c12, %c128_11], %13 {strides = array<i32>} : memref<16x401xbf16, #tpu.memory_space<vmem>>, vector<4x256xbf16>,
    %15 = tpu.iota {dimensions = array<i32: 1>} : vector<8x256xi32>
    %c16_i32 = arith.constant 16 : i32
    %c0_i32 = arith.constant 0 : i32
    %16 = arith.cmpi eq, %c16_i32, %c0_i32 : i32
    %c1_i32 = arith.constant 1 : i32
    %17 = arith.select %16, %c1_i32, %c16_i32 : i32
    %18 = vector.broadcast %17 : i32 to vector<8x256xi32>
    %19 = arith.remsi %15, %18 : vector<8x256xi32>
    %c0_i32_12 = arith.constant 0 : i32
    %20 = vector.broadcast %c0_i32_12 : i32 to vector<8x256xi32>
    %21 = arith.cmpi ne, %19, %20 : vector<8x256xi32>
    %c0_i32_13 = arith.constant 0 : i32
    %22 = vector.broadcast %c0_i32_13 : i32 to vector<8x256xi32>
    %23 = arith.cmpi slt, %19, %22 : vector<8x256xi32>
    %c0_i32_14 = arith.constant 0 : i32
    %24 = arith.cmpi slt, %17, %c0_i32_14 : i32
    %25 = vector.broadcast %24 : i1 to vector<8x256xi1>
    %26 = vector.broadcast %25 : vector<8x256xi1> to vector<8x256xi1>
    %27 = arith.xori %23, %26 : vector<8x256xi1>
    %28 = arith.andi %27, %21 : vector<8x256xi1>
    %29 = vector.broadcast %17 : i32 to vector<8x256xi32>
    %30 = arith.addi %19, %29 : vector<8x256xi32>
    %31 = arith.select %28, %30, %19 : vector<8x256xi1>, vector<8x256xi32>
    %c0_i32_15 = arith.constant 0 : i32
    %32 = vector.broadcast %c0_i32_15 : i32 to vector<8x256xi32>
    %33 = arith.cmpi ne, %31, %32 : vector<8x256xi32>
    %c15_i32 = arith.constant 15 : i32
    %34 = vector.broadcast %c15_i32 : i32 to vector<8x256xi32>
    %35 = arith.cmpi ne, %31, %34 : vector<8x256xi32>
    %cst_16 = arith.constant 0.000000e+00 : bf16
    %36 = vector.broadcast %cst_16 : bf16 to vector<8x256xbf16>
    %c0_17 = arith.constant 0 : index
    %c111_18 = arith.constant 111 : index
    %37 = vector.load %arg5[%c0_17, %c111_18] : memref<16x401xbf16, #tpu.memory_space<vmem>>, vector<8x256xbf16>
    %38 = arith.select %33, %37, %36 : vector<8x256xi1>, vector<8x256xbf16>
    %c0_19 = arith.constant 0 : index
    %c0_20 = arith.constant 0 : index
    %39 = vector.load %arg6[%c0_19, %c0_20] : memref<72x512xbf16, #tpu.memory_space<vmem>>, vector<8x256xbf16>
    tpu.vector_store %arg6[%c0_19, %c0_20], %38 {strides = array<i32>} : memref<72x512xbf16, #tpu.memory_space<vmem>>, vector<8x256xbf16>,
    %c8_21 = arith.constant 8 : index
    %c111_22 = arith.constant 111 : index
    %40 = vector.load %arg5[%c8_21, %c111_22] : memref<16x401xbf16, #tpu.memory_space<vmem>>, vector<8x256xbf16>
    %41 = arith.select %33, %40, %36 : vector<8x256xi1>, vector<8x256xbf16>
    %c0_23 = arith.constant 0 : index
    %c256 = arith.constant 256 : index
    %42 = vector.load %arg6[%c0_23, %c256] : memref<72x512xbf16, #tpu.memory_space<vmem>>, vector<8x256xbf16>
    tpu.vector_store %arg6[%c0_23, %c256], %41 {strides = array<i32>} : memref<72x512xbf16, #tpu.memory_space<vmem>>, vector<8x256xbf16>,
    %c0_24 = arith.constant 0 : index
    %c112 = arith.constant 112 : index
    %43 = vector.load %arg5[%c0_24, %c112] : memref<16x401xbf16, #tpu.memory_space<vmem>>, vector<8x256xbf16>
    %c8_25 = arith.constant 8 : index
    %c0_26 = arith.constant 0 : index
    %44 = vector.load %arg6[%c8_25, %c0_26] : memref<72x512xbf16, #tpu.memory_space<vmem>>, vector<8x256xbf16>
    tpu.vector_store %arg6[%c8_25, %c0_26], %43 {strides = array<i32>} : memref<72x512xbf16, #tpu.memory_space<vmem>>, vector<8x256xbf16>,
    %c8_27 = arith.constant 8 : index
    %c112_28 = arith.constant 112 : index
    %45 = vector.load %arg5[%c8_27, %c112_28] : memref<16x401xbf16, #tpu.memory_space<vmem>>, vector<8x256xbf16>
    %c8_29 = arith.constant 8 : index
    %c256_30 = arith.constant 256 : index
    %46 = vector.load %arg6[%c8_29, %c256_30] : memref<72x512xbf16, #tpu.memory_space<vmem>>, vector<8x256xbf16>
    tpu.vector_store %arg6[%c8_29, %c256_30], %45 {strides = array<i32>} : memref<72x512xbf16, #tpu.memory_space<vmem>>, vector<8x256xbf16>,
    %c0_31 = arith.constant 0 : index
    %c113 = arith.constant 113 : index
    %47 = vector.load %arg5[%c0_31, %c113] : memref<16x401xbf16, #tpu.memory_space<vmem>>, vector<8x256xbf16>
    %48 = arith.select %35, %47, %36 : vector<8x256xi1>, vector<8x256xbf16>
    %c16 = arith.constant 16 : index
    %c0_32 = arith.constant 0 : index
    %49 = vector.load %arg6[%c16, %c0_32] : memref<72x512xbf16, #tpu.memory_space<vmem>>, vector<8x256xbf16>
    tpu.vector_store %arg6[%c16, %c0_32], %48 {strides = array<i32>} : memref<72x512xbf16, #tpu.memory_space<vmem>>, vector<8x256xbf16>,
    %c8_33 = arith.constant 8 : index
    %c113_34 = arith.constant 113 : index
    %50 = vector.load %arg5[%c8_33, %c113_34] : memref<16x401xbf16, #tpu.memory_space<vmem>>, vector<8x256xbf16>
    %51 = arith.select %35, %50, %36 : vector<8x256xi1>, vector<8x256xbf16>
    %c16_35 = arith.constant 16 : index
    %c256_36 = arith.constant 256 : index
    %52 = vector.load %arg6[%c16_35, %c256_36] : memref<72x512xbf16, #tpu.memory_space<vmem>>, vector<8x256xbf16>
    tpu.vector_store %arg6[%c16_35, %c256_36], %51 {strides = array<i32>} : memref<72x512xbf16, #tpu.memory_space<vmem>>, vector<8x256xbf16>,
    %c0_37 = arith.constant 0 : index
    %c127 = arith.constant 127 : index
    %53 = vector.load %arg5[%c0_37, %c127] : memref<16x401xbf16, #tpu.memory_space<vmem>>, vector<8x256xbf16>
    %54 = arith.select %33, %53, %36 : vector<8x256xi1>, vector<8x256xbf16>
    %c24 = arith.constant 24 : index
    %c0_38 = arith.constant 0 : index
    %55 = vector.load %arg6[%c24, %c0_38] : memref<72x512xbf16, #tpu.memory_space<vmem>>, vector<8x256xbf16>
    tpu.vector_store %arg6[%c24, %c0_38], %54 {strides = array<i32>} : memref<72x512xbf16, #tpu.memory_space<vmem>>, vector<8x256xbf16>,
    %c8_39 = arith.constant 8 : index
    %c127_40 = arith.constant 127 : index
    %56 = vector.load %arg5[%c8_39, %c127_40] : memref<16x401xbf16, #tpu.memory_space<vmem>>, vector<8x256xbf16>
    %57 = arith.select %33, %56, %36 : vector<8x256xi1>, vector<8x256xbf16>
    %c24_41 = arith.constant 24 : index
    %c256_42 = arith.constant 256 : index
    %58 = vector.load %arg6[%c24_41, %c256_42] : memref<72x512xbf16, #tpu.memory_space<vmem>>, vector<8x256xbf16>
    tpu.vector_store %arg6[%c24_41, %c256_42], %57 {strides = array<i32>} : memref<72x512xbf16, #tpu.memory_space<vmem>>, vector<8x256xbf16>,
    %c0_43 = arith.constant 0 : index
    %c128_44 = arith.constant 128 : index
    %59 = vector.load %arg5[%c0_43, %c128_44] : memref<16x401xbf16, #tpu.memory_space<vmem>>, vector<8x256xbf16>
    %c32 = arith.constant 32 : index
    %c0_45 = arith.constant 0 : index
    %60 = vector.load %arg6[%c32, %c0_45] : memref<72x512xbf16, #tpu.memory_space<vmem>>, vector<8x256xbf16>
    tpu.vector_store %arg6[%c32, %c0_45], %59 {strides = array<i32>} : memref<72x512xbf16, #tpu.memory_space<vmem>>, vector<8x256xbf16>,
    %c8_46 = arith.constant 8 : index
    %c128_47 = arith.constant 128 : index
    %61 = vector.load %arg5[%c8_46, %c128_47] : memref<16x401xbf16, #tpu.memory_space<vmem>>, vector<8x256xbf16>
    %c32_48 = arith.constant 32 : index
    %c256_49 = arith.constant 256 : index
    %62 = vector.load %arg6[%c32_48, %c256_49] : memref<72x512xbf16, #tpu.memory_space<vmem>>, vector<8x256xbf16>
    tpu.vector_store %arg6[%c32_48, %c256_49], %61 {strides = array<i32>} : memref<72x512xbf16, #tpu.memory_space<vmem>>, vector<8x256xbf16>,
    %c0_50 = arith.constant 0 : index
    %c129 = arith.constant 129 : index
    %63 = vector.load %arg5[%c0_50, %c129] : memref<16x401xbf16, #tpu.memory_space<vmem>>, vector<8x256xbf16>
    %64 = arith.select %35, %63, %36 : vector<8x256xi1>, vector<8x256xbf16>
    %c40 = arith.constant 40 : index
    %c0_51 = arith.constant 0 : index
    %65 = vector.load %arg6[%c40, %c0_51] : memref<72x512xbf16, #tpu.memory_space<vmem>>, vector<8x256xbf16>
    tpu.vector_store %arg6[%c40, %c0_51], %64 {strides = array<i32>} : memref<72x512xbf16, #tpu.memory_space<vmem>>, vector<8x256xbf16>,
    %c8_52 = arith.constant 8 : index
    %c129_53 = arith.constant 129 : index
    %66 = vector.load %arg5[%c8_52, %c129_53] : memref<16x401xbf16, #tpu.memory_space<vmem>>, vector<8x256xbf16>
    %67 = arith.select %35, %66, %36 : vector<8x256xi1>, vector<8x256xbf16>
    %c40_54 = arith.constant 40 : index
    %c256_55 = arith.constant 256 : index
    %68 = vector.load %arg6[%c40_54, %c256_55] : memref<72x512xbf16, #tpu.memory_space<vmem>>, vector<8x256xbf16>
    tpu.vector_store %arg6[%c40_54, %c256_55], %67 {strides = array<i32>} : memref<72x512xbf16, #tpu.memory_space<vmem>>, vector<8x256xbf16>,
    %c0_56 = arith.constant 0 : index
    %c143 = arith.constant 143 : index
    %69 = vector.load %arg5[%c0_56, %c143] : memref<16x401xbf16, #tpu.memory_space<vmem>>, vector<8x256xbf16>
    %70 = arith.select %33, %69, %36 : vector<8x256xi1>, vector<8x256xbf16>
    %c48 = arith.constant 48 : index
    %c0_57 = arith.constant 0 : index
    %71 = vector.load %arg6[%c48, %c0_57] : memref<72x512xbf16, #tpu.memory_space<vmem>>, vector<8x256xbf16>
    tpu.vector_store %arg6[%c48, %c0_57], %70 {strides = array<i32>} : memref<72x512xbf16, #tpu.memory_space<vmem>>, vector<8x256xbf16>,
    %c8_58 = arith.constant 8 : index
    %c143_59 = arith.constant 143 : index
    %72 = vector.load %arg5[%c8_58, %c143_59] : memref<16x401xbf16, #tpu.memory_space<vmem>>, vector<8x256xbf16>
    %73 = arith.select %33, %72, %36 : vector<8x256xi1>, vector<8x256xbf16>
    %c48_60 = arith.constant 48 : index
    %c256_61 = arith.constant 256 : index
    %74 = vector.load %arg6[%c48_60, %c256_61] : memref<72x512xbf16, #tpu.memory_space<vmem>>, vector<8x256xbf16>
    tpu.vector_store %arg6[%c48_60, %c256_61], %73 {strides = array<i32>} : memref<72x512xbf16, #tpu.memory_space<vmem>>, vector<8x256xbf16>,
    %c0_62 = arith.constant 0 : index
    %c144 = arith.constant 144 : index
    %75 = vector.load %arg5[%c0_62, %c144] : memref<16x401xbf16, #tpu.memory_space<vmem>>, vector<8x256xbf16>
    %c56 = arith.constant 56 : index
    %c0_63 = arith.constant 0 : index
    %76 = vector.load %arg6[%c56, %c0_63] : memref<72x512xbf16, #tpu.memory_space<vmem>>, vector<8x256xbf16>
    tpu.vector_store %arg6[%c56, %c0_63], %75 {strides = array<i32>} : memref<72x512xbf16, #tpu.memory_space<vmem>>, vector<8x256xbf16>,
    %c8_64 = arith.constant 8 : index
    %c144_65 = arith.constant 144 : index
    %77 = vector.load %arg5[%c8_64, %c144_65] : memref<16x401xbf16, #tpu.memory_space<vmem>>, vector<8x256xbf16>
    %c56_66 = arith.constant 56 : index
    %c256_67 = arith.constant 256 : index
    %78 = vector.load %arg6[%c56_66, %c256_67] : memref<72x512xbf16, #tpu.memory_space<vmem>>, vector<8x256xbf16>
    tpu.vector_store %arg6[%c56_66, %c256_67], %77 {strides = array<i32>} : memref<72x512xbf16, #tpu.memory_space<vmem>>, vector<8x256xbf16>,
    %c0_68 = arith.constant 0 : index
    %c145 = arith.constant 145 : index
    %79 = vector.load %arg5[%c0_68, %c145] : memref<16x401xbf16, #tpu.memory_space<vmem>>, vector<8x256xbf16>
    %80 = arith.select %35, %79, %36 : vector<8x256xi1>, vector<8x256xbf16>
    %c64 = arith.constant 64 : index
    %c0_69 = arith.constant 0 : index
    %81 = vector.load %arg6[%c64, %c0_69] : memref<72x512xbf16, #tpu.memory_space<vmem>>, vector<8x256xbf16>
    tpu.vector_store %arg6[%c64, %c0_69], %80 {strides = array<i32>} : memref<72x512xbf16, #tpu.memory_space<vmem>>, vector<8x256xbf16>,
    %c8_70 = arith.constant 8 : index
    %c145_71 = arith.constant 145 : index
    %82 = vector.load %arg5[%c8_70, %c145_71] : memref<16x401xbf16, #tpu.memory_space<vmem>>, vector<8x256xbf16>
    %83 = arith.select %35, %82, %36 : vector<8x256xi1>, vector<8x256xbf16>
    %c64_72 = arith.constant 64 : index
    %c256_73 = arith.constant 256 : index
    %84 = vector.load %arg6[%c64_72, %c256_73] : memref<72x512xbf16, #tpu.memory_space<vmem>>, vector<8x256xbf16>
    tpu.vector_store %arg6[%c64_72, %c256_73], %83 {strides = array<i32>} : memref<72x512xbf16, #tpu.memory_space<vmem>>, vector<8x256xbf16>,
    %c0_74 = arith.constant 0 : index
    %c0_75 = arith.constant 0 : index
    %85 = vector.load %arg2[%c0_74, %c0_75] : memref<8x72xbf16, #tpu.memory_space<vmem>>, vector<8x72xbf16>
    %c0_76 = arith.constant 0 : index
    %c0_77 = arith.constant 0 : index
    %86 = vector.load %arg6[%c0_76, %c0_77] : memref<72x512xbf16, #tpu.memory_space<vmem>>, vector<72x512xbf16>
    %cst_78 = arith.constant dense<0.000000e+00> : vector<8x512xf32>
    %87 = tpu.matmul %85, %86, %cst_78 {dimension_numbers = #tpu.dot_dimension_numbers<[1], [0], [0], [1], [0, 0, 1, 1], [], []>} : vector<8x72xbf16>, vector<72x512xbf16>, vector<8x512xf32> -> vector<8x512xf32>
    %c0_79 = arith.constant 0 : index
    %c0_80 = arith.constant 0 : index
    %88 = vector.load %arg3[%c0_79, %c0_80] : memref<8x1xf32, #tpu.memory_space<vmem>>, vector<8x1xf32>
    %89 = vector.broadcast %88 : vector<8x1xf32> to vector<8x512xf32>
    %90 = arith.addf %87, %89 : vector<8x512xf32>
    %cst_81 = arith.constant 0.000000e+00 : f32
    %91 = vector.broadcast %cst_81 : f32 to vector<8x512xf32>
    %92 = arith.maximumf %90, %91 : vector<8x512xf32>
    %c0_82 = arith.constant 0 : index
    %c0_83 = arith.constant 0 : index
    %c0_84 = arith.constant 0 : index
    %93 = vector.load %arg1[%c0_82, %c0_83, %c0_84] : memref<2x4x256xf32, #tpu.memory_space<vmem>>, vector<1x4x256xf32>
    %94 = vector.shape_cast %93 : vector<1x4x256xf32> to vector<4x256xf32>
    %c0_85 = arith.constant 0 : index
    %c0_86 = arith.constant 0 : index
    %c0_87 = arith.constant 0 : index
    %95 = vector.load %arg4[%c0_85, %c0_86, %c0_87] : memref<2x12x256xf32, #tpu.memory_space<vmem>>, vector<1x4x256xf32>
    %96 = vector.shape_cast %95 : vector<1x4x256xf32> to vector<4x256xf32>
    %97 = vector.shape_cast %94 : vector<4x256xf32> to vector<1x4x256xf32>
    tpu.vector_store %arg4[%c0_85, %c0_86, %c0_87], %97 {strides = array<i32>} : memref<2x12x256xf32, #tpu.memory_space<vmem>>, vector<1x4x256xf32>,
    %98 = vector.extract_strided_slice %92 {offsets = [0, 0], sizes = [8, 256], strides = [1, 1]} : vector<8x512xf32> to vector<8x256xf32>
    %c0_88 = arith.constant 0 : index
    %c4_89 = arith.constant 4 : index
    %c0_90 = arith.constant 0 : index
    %99 = vector.load %arg4[%c0_88, %c4_89, %c0_90] : memref<2x12x256xf32, #tpu.memory_space<vmem>>, vector<1x8x256xf32>
    %100 = vector.shape_cast %99 : vector<1x8x256xf32> to vector<8x256xf32>
    %101 = vector.shape_cast %98 : vector<8x256xf32> to vector<1x8x256xf32>
    tpu.vector_store %arg4[%c0_88, %c4_89, %c0_90], %101 {strides = array<i32>} : memref<2x12x256xf32, #tpu.memory_space<vmem>>, vector<1x8x256xf32>,
    %c1_91 = arith.constant 1 : index
    %c0_92 = arith.constant 0 : index
    %c0_93 = arith.constant 0 : index
    %102 = vector.load %arg1[%c1_91, %c0_92, %c0_93] : memref<2x4x256xf32, #tpu.memory_space<vmem>>, vector<1x4x256xf32>
    %103 = vector.shape_cast %102 : vector<1x4x256xf32> to vector<4x256xf32>
    %c1_94 = arith.constant 1 : index
    %c0_95 = arith.constant 0 : index
    %c0_96 = arith.constant 0 : index
    %104 = vector.load %arg4[%c1_94, %c0_95, %c0_96] : memref<2x12x256xf32, #tpu.memory_space<vmem>>, vector<1x4x256xf32>
    %105 = vector.shape_cast %104 : vector<1x4x256xf32> to vector<4x256xf32>
    %106 = vector.shape_cast %103 : vector<4x256xf32> to vector<1x4x256xf32>
    tpu.vector_store %arg4[%c1_94, %c0_95, %c0_96], %106 {strides = array<i32>} : memref<2x12x256xf32, #tpu.memory_space<vmem>>, vector<1x4x256xf32>,
    %107 = vector.extract_strided_slice %92 {offsets = [0, 256], sizes = [8, 256], strides = [1, 1]} : vector<8x512xf32> to vector<8x256xf32>
    %c1_97 = arith.constant 1 : index
    %c4_98 = arith.constant 4 : index
    %c0_99 = arith.constant 0 : index
    %108 = vector.load %arg4[%c1_97, %c4_98, %c0_99] : memref<2x12x256xf32, #tpu.memory_space<vmem>>, vector<1x8x256xf32>
    %109 = vector.shape_cast %108 : vector<1x8x256xf32> to vector<8x256xf32>
    %110 = vector.shape_cast %107 : vector<8x256xf32> to vector<1x8x256xf32>
    tpu.vector_store %arg4[%c1_97, %c4_98, %c0_99], %110 {strides = array<i32>} : memref<2x12x256xf32, #tpu.memory_space<vmem>>, vector<1x8x256xf32>,
    return
  }
  func.func @transform_0(%arg0: i32) -> (i32, i32, i32) {
    %c0_i32 = arith.constant 0 : i32
    %c0_i32_0 = arith.constant 0 : i32
    %c0_i32_1 = arith.constant 0 : i32
    %c0_i32_2 = arith.constant 0 : i32
    return %c0_i32, %c0_i32_0, %c0_i32_1 : i32, i32, i32
  }
  func.func @transform_1(%arg0: i32) -> (i32, i32) {
    %c0_i32 = arith.constant 0 : i32
    %c0_i32_0 = arith.constant 0 : i32
    %c0_i32_1 = arith.constant 0 : i32
    return %c0_i32, %c0_i32_0 : i32, i32
  }
  func.func @transform_2(%arg0: i32) -> (i32, i32) {
    %c0_i32 = arith.constant 0 : i32
    %c0_i32_0 = arith.constant 0 : i32
    %c0_i32_1 = arith.constant 0 : i32
    return %c0_i32, %c0_i32_0 : i32, i32
  }
  func.func @transform_3(%arg0: i32) -> (i32, i32, i32) {
    %c0_i32 = arith.constant 0 : i32
    %c0_i32_0 = arith.constant 0 : i32
    %c0_i32_1 = arith.constant 0 : i32
    %c0_i32_2 = arith.constant 0 : i32
    return %c0_i32, %c0_i32_0, %c0_i32_1 : i32, i32, i32
  }
}

</mosaic_0001>

<bundles_post_ra>
// kernel: tpu_custom_call.1
= control target key start
LH: loop header
LB: loop body
LE: loop exit
PB: predicated region body
PF: predicated region fallthrough
CT: control target
= control target key end

     0   :  { %8 = vsyncpa [#allocation5], 0  ;;  %s826_s15 = smov [#allocation4]   ;;  %s827_s17 = smov 128   ;;  %v60_v0 = vlaneseq  ;;  %s1290_s0 = inlined_call_operand.hbm [shape: f32[2,4,256], index: 0, kind: input, shape index: {}]   ;;  %s1291_s1 = inlined_call_operand.vmem [shape: bf16[8,72], index: 1, kind: input, shape index: {}]   ;;  %s1292_s2 = inlined_call_operand.vmem [shape: f32[8,1], index: 2, kind: input, shape index: {}]   ;;  %s1293_s3 = inlined_call_operand.vmem [shape: f32[2,12,256], index: 3, kind: output, shape index: {}]  }
   0x1   :  { %s13_s14 = sshll.u32 %s1290_s0, 4  ;;  %s15_s16 = sshll.u32 %s826_s15, 4  ;;  %s14_s14 = int_to_ptr.hbm [resolvable:$true] %s13_s14  ;;  %s16_s16 = int_to_ptr.vmem [resolvable:$true] %s15_s16 }
   0x2   :  { %s828_s18 = smov 8  }
   0x3   :  { %21 = dma.hbm_to_vmem [thread:$0]  %s14_s14, 256, %s16_s16, [#allocation5], %s827_s17, %s827_s17, %s828_s18  }
   0x4   :  { %824 = dma.done.wait [#allocation5], 256  }
   0x5   :  { %825 = vsyncadd [#allocation5], 4294967040  ;;  %vm36_vm0 = vcmask 134144   ;;  %v829_v1 = vmov 0   ;;  %v61_v2 = vand.u32 127, %v60_v0  ;;  %v39_v6 = vld [vmem:[#allocation4] sm:$0xff] }
   0x6   :  { %48 = vst [vmem:[#allocation2 + $0x4] sm:$0xcc] %v829_v1  ;;  %798 = vset.pattern.permute.xlu2 %v829_v1  ;;  %799 = vset.pattern.permute.xlu0 %v829_v1  ;;  %s830_s0 = smov 17   ;;  %s831_s19 = smov 1   ;;  %v50_v9 = vld [vmem:[#allocation4 + $0x8] sm:$0xff]  ;;  %vm33_vm7 = vcmask 1044344   ;;  %v907_v28 = vunpack.c.l.b16 %v829_v1  ;;  %v910_v29 = vunpack.c.h.b16 %v829_v1 }
   0x7   :  { %59 = vst [vmem:[#allocation2 + $0x14] sm:$0xcc] %v829_v1  ;;  %v62_v3 = vadd.s32 128, %v61_v2  ;;  %v67_v4 = vand.u32 15, %v61_v2  ;;  %s832_s20 = smov 127   ;;  %s833_s21 = smov 15  }
   0x8   :  { %38 = vst.msk [vmem:[#allocation2 + $0x1c] sm:$0xf] %vm36_vm0, %v829_v1  ;;  %s834_s22 = smov 113   ;;  %s835_s23 = smov 111  }
   0x9   :  { %37 = vst.msk [vmem:[#allocation2 + $0xc] sm:$0xf] %vm36_vm0, %v829_v1  ;;  %v74_v5 = vand.u32 15, %v62_v3  ;;  %vm89_vm1 = vcmp.ne.s32.totalorder %v67_v4, 15  ;;  %vm87_vm2 = vcmp.ne.s32.totalorder %v67_v4, 0  ;;  %s836_s24 = smov 112  }
   0xa   :  { %41 = vst [vmem:[#allocation1] ss:$2 sm:$0xff] %v39_v6  ;;  %s837_s6 = smov 16   ;;  %vm1295_vm0 = vcmask 121856  }
   0xb   :  { %vm90_vm3 = vcmp.ne.s32.totalorder %v74_v5, 15  ;;  %vm88_vm4 = vcmp.ne.s32.totalorder %v74_v5, 0  ;;  %35 = vst.msk [vmem:[#allocation2 + $0x10] sm:$0xf] %vm33_vm7, %v829_v1 }
   0xc   :  { %vm177_vm5 = vmpackc.low %vm90_vm3, %vm89_vm1  ;;  %34 = vst.msk [vmem:[#allocation2] sm:$0xf] %vm33_vm7, %v829_v1 }
   0xd   :  { %v178_v7 = vsel %vm177_vm5, 65537, %v829_v1  ;;  %vm93_vm6 = vmpackc.low %vm88_vm4, %vm87_vm2  ;;  %vm1294_vm5 = vcmask 138240  }
   0xe   :  { %416 = vrot.lane.b32.xlu0 %v178_v7, %s830_s0  ;;  %287 = vrot.lane.b32.xlu1 %v178_v7, %s831_s19  ;;  %v94_v8 = vsel %vm93_vm6, 65537, %v829_v1 }
   0xf   :  { %231 = vrot.lane.b32.xlu2 %v94_v8, %s832_s20  ;;  %v401_v15 = vld [vmem:[#allocation2 + $0x1c] sm:$0xf] }
  0x10   :  { %v386_v20 = vld [vmem:[#allocation2 + $0xc] sm:$0xf]  ;;  %v449_v35 = vld [vmem:[#allocation2 + $0x1c] sm:$0xf] }
  0x11   :  { %v42_v10 = vld.sshfl [vmem:[#allocation1] sm:$0xff pattern:$0x75316420]  ;;  %v43_v11 = vld.sshfl [vmem:[#allocation1 + $0x8] sm:$0xff pattern:$0x75316420] }
  0x12   :  { %v46_v12 = vpack.c.bf16 %v43_v11, %v42_v10  ;;  %52 = vst [vmem:[#allocation1] ss:$2 sm:$0xff] %v50_v9  ;;  %v415_v34 = vld [vmem:[#allocation2 + $0xc] sm:$0xf]  ;;  %v320_v46 = vld [vmem:[#allocation2 + $0x1c] sm:$0xf] }
  0x13   :  { %v286_v50 = vld [vmem:[#allocation2 + $0xc] sm:$0xf]  ;;  %v370_v51 = vld [vmem:[#allocation2 + $0x1c] sm:$0xf] }
  0x14   :  { %47 = vst [vmem:[#allocation2 + $0x4] sm:$0x33] %v46_v12  ;;  %v336_v1 = vld [vmem:[#allocation2 + $0xc] sm:$0xf] }
  0x16   :  { %337 = vrot.lane.b32.xlu0 %v94_v8, %s833_s21  ;;  %179 = vrot.lane.b32.xlu1 %v178_v7, %s834_s22 }
  0x17   :  { %95 = vrot.lane.b32.xlu2 %v94_v8, %s835_s23 }
  0x19   :  { %v53_v13 = vld.sshfl [vmem:[#allocation1] sm:$0xff pattern:$0x75316420]  ;;  %v54_v14 = vld.sshfl [vmem:[#allocation1 + $0x8] sm:$0xff pattern:$0x75316420] }
  0x1a   :  { %v57_v16 = vpack.c.bf16 %v54_v14, %v53_v13  ;;  %654 = vst [vmem:[#allocation1] ss:$2 sm:$0xff] %v39_v6 }
  0x1b   :  { %v875_v17 = vld [vmem:[#allocation2 + $0x4] sm:$0xff] }
  0x1c   :  { %58 = vst [vmem:[#allocation2 + $0x14] sm:$0x33] %v57_v16  ;;  %v176_v3 = vld [vmem:[#allocation2 + $0x8] sm:$0xf]  ;;  %v91_v60 = vld [vmem:[#allocation2] sm:$0xff] }
  0x1d   :  { %282 = vst [vmem:[#allocation3 + $0x40] sm:$0xff] %v875_v17 }
  0x1e   :  { %406 = vrot.lane.b32.xlu1 %v401_v15, %s836_s24  ;;  %389 = vrot.lane.b32.xlu0 %v875_v17, %s836_s24 }
  0x21   :  { %v655_v18 = vld.sshfl [vmem:[#allocation1] sm:$0xff pattern:$0x75316420]  ;;  %v656_v19 = vld.sshfl [vmem:[#allocation1 + $0x8] sm:$0xff pattern:$0x75316420] }
  0x22   :  { %659 = vst [vmem:[%s1293_s3] sm:$0xf] %v655_v18 }
  0x23   :  { %v882_v21 = vld [vmem:[#allocation2 + $0x14] sm:$0xff]  ;;  %660 = vst [vmem:[%s1293_s3 + $0x8] sm:$0xf] %v656_v19 }
  0x24   :  { %673 = vst [vmem:[#allocation1] ss:$2 sm:$0xff] %v50_v9  ;;  %v897_v24 = vld [vmem:[#allocation2 + $0x10] sm:$0xff]  ;;  %v162_v25 = vld [vmem:[#allocation2 + $0x18] sm:$0xf] }
  0x25   :  { %284 = vst [vmem:[#allocation3 + $0x48] sm:$0xff] %v882_v21  ;;  %167 = vrot.lane.b32.xlu2 %v162_v25, %s837_s6  ;;  %v214_v0 = vld [vmem:[#allocation2 + $0x18] sm:$0xf] }
  0x26   :  { %391 = vrot.lane.b32.xlu1 %v386_v20, %s836_s24  ;;  %404 = vrot.lane.b32.xlu0 %v882_v21, %s836_s24 }
  0x2b   :  { %v674_v22 = vld.sshfl [vmem:[#allocation1] sm:$0xff pattern:$0x75316420]  ;;  %v675_v23 = vld.sshfl [vmem:[#allocation1 + $0x8] sm:$0xff pattern:$0x75316420] }
  0x2c   :  { %764 = vst [vmem:[%s1293_s3 + $0x20] sm:$0xf] %v674_v22  ;;  %v131_v22 = vld [vmem:[#allocation2 + $0x18] sm:$0xf] }
  0x2d   :  { %765 = vst [vmem:[%s1293_s3 + $0x28] sm:$0xf] %v675_v23  ;;  %v266_v23 = vld [vmem:[#allocation2 + $0x18] sm:$0xf] }
  0x2e   :  { %165 = vrot.lane.b32.xlu1 %v897_v24, %s837_s6 }
  0x69   :  { %v920_v36 = vpop.permute.xlu2 %231 }
  0x6a   :  { %v233_v2 = vrot.slane %v920_v36, 4 }
  0x6c   :  { %v243_v10 = vunpack.c.l.b16 %v233_v2  ;;  %v244_v11 = vunpack.c.h.b16 %v233_v2 }
  0x71   :  { %v963_v58 = vpop.permute.xlu2 %95 }
  0x72   :  { %v985_v63 = vrot.slane %v963_v58, 4 }
  0x74   :  { %v107_v4 = vunpack.c.l.b16 %v985_v63  ;;  %v108_v5 = vunpack.c.h.b16 %v985_v63 }
  0x76   :  { %vm1000_vm6 = vcmp.ne.s32.totalorder %v107_v4, %v907_v28  ;;  %vm1005_vm7 = vcmp.ne.s32.totalorder %v108_v5, %v910_v29 }
  0x80   :  { %v902_v26 = vpop.permute.xlu0 %416  ;;  %v904_v27 = vpop.permute.xlu1 %287 }
  0x81   :  { %v913_v30 = vrot.slane %v902_v26, 4  ;;  %v916_v31 = vrot.slane %v904_v27, 4 }
  0x83   :  { %v427_v32 = vunpack.c.l.b16 %v913_v30  ;;  %v428_v33 = vunpack.c.h.b16 %v913_v30  ;;  %v298_v37 = vunpack.c.l.b16 %v916_v31  ;;  %v299_v38 = vunpack.c.h.b16 %v916_v31 }
  0x84   :  { %v419_v20 = vsel %vm1294_vm5, %v913_v30, %v902_v26  ;;  %vm1297_vm5 = vcmask 924672  }
  0x85   :  { %vm431_vm8 = vcmp.ne.s32.totalorder %v427_v32, %v907_v28  ;;  %vm432_vm9 = vcmp.ne.s32.totalorder %v428_v33, %v910_v29  ;;  %vm927_vm11 = vcmp.ne.s32.totalorder %v298_v37, %v907_v28  ;;  %vm932_vm12 = vcmp.ne.s32.totalorder %v299_v38, %v910_v29 }
  0x86   :  { %vm433_vm10 = vmpackc.low %vm432_vm9, %vm431_vm8  ;;  %v420_v25 = vunpack.c.l.b16 %v419_v20  ;;  %v421_v32 = vunpack.c.h.b16 %v419_v20 }
  0x87   :  { %v435_v39 = vsel %vm433_vm10, %v415_v34, 0  ;;  %v451_v40 = vsel %vm433_vm10, %v449_v35, 0  ;;  %vm304_vm13 = vmpackc.low %vm932_vm12, %vm927_vm11  ;;  %vm1023_vm10 = vcmp.ne.s32.totalorder %v243_v10, %v907_v28  ;;  %vm1028_vm11 = vcmp.ne.s32.totalorder %v244_v11, %v910_v29 }
  0x88   :  { %v338_v43 = vpop.permute.xlu0 %337  ;;  %440 = vrot.lane.b32.xlu0 %v435_v39, %s835_s23  ;;  %456 = vrot.lane.b32.xlu1 %v451_v40, %s835_s23  ;;  %v938_v44 = vpop.permute.xlu1 %179  ;;  %v322_v52 = vsel %vm304_vm13, %v320_v46, 0  ;;  %v306_v57 = vsel %vm304_vm13, %v286_v50, 0  ;;  %vm113_vm12 = vmpackc.low %vm1005_vm7, %vm1000_vm6  ;;  %vm1339_vm6 = vcmask 1039360   ;;  %vm1340_vm7 = vcmask 121856  }
  0x89   :  { %v339_v45 = vrot.slane %v338_v43, 4  ;;  %v945_v47 = vrot.slane %v938_v44, 4  ;;  %v133_v26 = vsel %vm113_vm12, %v131_v22, 0 }
  0x8b   :  { %v348_v48 = vunpack.c.l.b16 %v339_v45  ;;  %v349_v49 = vunpack.c.h.b16 %v339_v45  ;;  %v191_v55 = vunpack.c.l.b16 %v945_v47  ;;  %v192_v56 = vunpack.c.h.b16 %v945_v47 }
  0x8c   :  { %v340_v62 = vsel %vm1295_vm0, %v339_v45, %v338_v43  ;;  %vm98_vm0 = vcmask 908288   ;;  %v183_v43 = vsel %vm1297_vm5, %v945_v47, %v938_v44 }
  0x8d   :  { %vm948_vm14 = vcmp.ne.s32.totalorder %v348_v48, %v907_v28  ;;  %vm953_vm15 = vcmp.ne.s32.totalorder %v349_v49, %v910_v29  ;;  %vm971_vm2 = vcmp.ne.s32.totalorder %v191_v55, %v907_v28  ;;  %vm976_vm3 = vcmp.ne.s32.totalorder %v192_v56, %v910_v29  ;;  %v230_v49 = vld [vmem:[#allocation2 + $0x8] sm:$0xf] }
  0x8e   :  { %vm354_vm1 = vmpackc.low %vm953_vm15, %vm948_vm14  ;;  %v341_v6 = vunpack.c.l.b16 %v340_v62  ;;  %v342_v7 = vunpack.c.h.b16 %v340_v62  ;;  %vm1296_vm15 = vcmask 7168   ;;  %v99_v48 = vsel %vm98_vm0, %v985_v63, %v963_v58 }
  0x8f   :  { %v372_v59 = vsel %vm354_vm1, %v370_v51, 0  ;;  %vm197_vm4 = vmpackc.low %vm976_vm3, %vm971_vm2  ;;  %v356_v9 = vsel %vm354_vm1, %v336_v1, 0  ;;  %vm1298_vm1 = vcmask 1039360   ;;  %vm424_vm2 = vcmp.ne.s32.totalorder %v420_v25, %v907_v28 }
  0x90   :  { %377 = vrot.lane.b32.xlu2 %v372_v59, %s834_s22  ;;  %327 = vrot.lane.b32.xlu0 %v322_v52, %s832_s20  ;;  %v216_v8 = vsel %vm197_vm4, %v214_v0, 0  ;;  %v199_v12 = vsel %vm197_vm4, %v176_v3, 0  ;;  %vm1012_vm8 = vcmp.ne.s32.totalorder %v341_v6, %v907_v28  ;;  %vm1017_vm9 = vcmp.ne.s32.totalorder %v342_v7, %v910_v29  ;;  %vm249_vm14 = vmpackc.low %vm1028_vm11, %vm1023_vm10  ;;  %v407_v55 = vpop.permute.xlu1 %406  ;;  %v390_v56 = vpop.permute.xlu0 %389  ;;  %v147_v7 = vld [vmem:[#allocation2 + $0x8] sm:$0xf] }
  0x91   :  { %311 = vrot.lane.b32.xlu1 %v306_v57, %s832_s20  ;;  %vm347_vm13 = vmpackc.low %vm1017_vm9, %vm1012_vm8  ;;  %v268_v33 = vsel %vm249_vm14, %v266_v23, 0  ;;  %vm425_vm3 = vcmp.ne.s32.totalorder %v421_v32, %v910_v29  ;;  %v290_v34 = vsel %vm1296_vm15, %v916_v31, %v904_v27  ;;  %v235_v35 = vsel %vm1298_vm1, %v233_v2, %v920_v36 }
  0x92   :  { %v371_v30 = vsel %vm347_vm13, %v882_v21, 0  ;;  %vm426_vm4 = vmpackc.low %vm425_vm3, %vm424_vm2  ;;  %v291_v37 = vunpack.c.l.b16 %v290_v34  ;;  %v292_v38 = vunpack.c.h.b16 %v290_v34  ;;  %v236_v39 = vunpack.c.l.b16 %v235_v35 }
  0x93   :  { %v237_v40 = vunpack.c.h.b16 %v235_v35  ;;  %v450_v41 = vsel %vm426_vm4, %v882_v21, 0  ;;  %v434_v42 = vsel %vm426_vm4, %v875_v17, 0  ;;  %v355_v27 = vsel %vm347_vm13, %v875_v17, 0 }
  0x94   :  { %vm1085_vm2 = vcmp.ne.s32.totalorder %v291_v37, %v907_v28  ;;  %vm1090_vm3 = vcmp.ne.s32.totalorder %v292_v38, %v910_v29  ;;  %vm1098_vm4 = vcmp.ne.s32.totalorder %v236_v39, %v907_v28  ;;  %v184_v44 = vunpack.c.l.b16 %v183_v43 }
  0x95   :  { %vm1103_vm8 = vcmp.ne.s32.totalorder %v237_v40, %v910_v29  ;;  %vm297_vm9 = vmpackc.low %vm1090_vm3, %vm1085_vm2  ;;  %v185_v47 = vunpack.c.h.b16 %v183_v43  ;;  %v100_v50 = vunpack.c.l.b16 %v99_v48  ;;  %v101_v51 = vunpack.c.h.b16 %v99_v48 }
  0x96   :  { %vm242_vm13 = vmpackc.low %vm1103_vm8, %vm1098_vm4  ;;  %v251_v52 = vsel %vm249_vm14, %v230_v49, 0  ;;  %v321_v53 = vsel %vm297_vm9, %v882_v21, 0  ;;  %vm1139_vm10 = vcmp.ne.s32.totalorder %v184_v44, %v907_v28  ;;  %v409_v61 = vrot.slane %v407_v55, 4 }
  0x97   :  { %v267_v54 = vsel %vm242_vm13, %v897_v24, 0  ;;  %vm1144_vm11 = vcmp.ne.s32.totalorder %v185_v47, %v910_v29  ;;  %vm1149_vm14 = vcmp.ne.s32.totalorder %v100_v50, %v907_v28  ;;  %vm1154_vm15 = vcmp.ne.s32.totalorder %v101_v51, %v910_v29  ;;  %vm1346_vm8 = vmmov %vm1339_vm6 }
  0x98   :  { %221 = vrot.lane.b32.xlu0 %v216_v8, %s833_s21  ;;  %361 = vrot.lane.b32.xlu2 %v356_v9, %s834_s22  ;;  %vm190_vm5 = vmpackc.low %vm1144_vm11, %vm1139_vm10  ;;  %v305_v28 = vsel %vm297_vm9, %v875_v17, 0  ;;  %v393_v62 = vrot.slane %v390_v56, 4  ;;  %vm124_vm2 = vcmask 1043456   ;;  %v392_v63 = vpop.permute.xlu1 %391  ;;  %v405_v0 = vpop.permute.xlu0 %404  ;;  %vm396_vm3 = vcmask 916480  }
  0x99   :  { %204 = vrot.lane.b32.xlu1 %v199_v12, %s833_s21  ;;  %vm106_vm1 = vmpackc.low %vm1154_vm15, %vm1149_vm14  ;;  %v215_v29 = vsel %vm190_vm5, %v897_v24, 0  ;;  %v394_v1 = vrot.slane %v392_v63, 4  ;;  %v408_v2 = vrot.slane %v405_v0, 4  ;;  %v198_v9 = vsel %vm190_vm5, %v91_v60, 0  ;;  %v168_v12 = vpop.permute.xlu2 %167 }
  0x9a   :  { %v114_v17 = vsel %vm106_vm1, %v91_v60, 0  ;;  %v132_v8 = vsel %vm106_vm1, %v897_v24, 0  ;;  %v250_v10 = vsel %vm242_vm13, %v91_v60, 0  ;;  %v92_v24 = vld [vmem:[#allocation2 + $0x8] sm:$0xf]  ;;  %v170_v15 = vrot.slane %v168_v12, 4  ;;  %vm1348_vm13 = vmmov %vm1340_vm7 }
  0x9b   :  { %v395_v3 = vsel %vm124_vm2, %v393_v62, %v394_v1  ;;  %v410_v4 = vsel %vm124_vm2, %v408_v2, %v409_v61  ;;  %v115_v11 = vsel %vm113_vm12, %v92_v24, 0  ;;  %vm157_vm5 = vcmask 130048  }
  0x9c   :  { %v397_v5 = vsel %vm396_vm3, %v390_v56, %v395_v3  ;;  %v411_v6 = vsel %vm396_vm3, %v405_v0, %v410_v4  ;;  %vm1341_vm12 = vcmask 924672   ;;  %vm1342_vm15 = vcmask 138240  }
  0x9d   :  { %399 = vst [vmem:[#allocation3 + $0x70] sm:$0xff] %v397_v5  ;;  %vm1343_vm1 = vmmov %vm1341_vm12  ;;  %vm579_vm10 = vcmask 588800  }
  0x9e   :  { %413 = vst [vmem:[#allocation3 + $0x78] sm:$0xff] %v411_v6  ;;  %vm1347_vm9 = vmmov %vm1342_vm15 }
  0xa0   :  { %138 = vrot.lane.b32.xlu0 %v133_v26, %s830_s0  ;;  %273 = vrot.lane.b32.xlu2 %v268_v33, %s831_s19  ;;  %v166_v16 = vpop.permute.xlu1 %165 }
  0xa1   :  { %375 = vrot.lane.b32.xlu1 %v371_v30, %s834_s22  ;;  %v169_v18 = vrot.slane %v166_v16, 4 }
  0xa3   :  { %v171_v19 = vsel %vm124_vm2, %v169_v18, %v170_v15 }
  0xa4   :  { %v172_v20 = vsel %vm157_vm5, %v166_v16, %v171_v19 }
  0xa5   :  { %174 = vst [vmem:[#allocation3 + $0x18] sm:$0xff] %v172_v20 }
  0xa8   :  { %454 = vrot.lane.b32.xlu0 %v450_v41, %s835_s23  ;;  %438 = vrot.lane.b32.xlu2 %v434_v42, %s835_s23 }
  0xa9   :  { %359 = vrot.lane.b32.xlu1 %v355_v27, %s834_s22 }
  0xb0   :  { %256 = vrot.lane.b32.xlu0 %v251_v52, %s831_s19  ;;  %325 = vrot.lane.b32.xlu2 %v321_v53, %s832_s20 }
  0xb1   :  { %271 = vrot.lane.b32.xlu1 %v267_v54, %s831_s19 }
  0xb8   :  { %309 = vrot.lane.b32.xlu0 %v305_v28, %s832_s20  ;;  %219 = vrot.lane.b32.xlu2 %v215_v29, %s833_s21 }
  0xb9   :  { %118 = vrot.lane.b32.xlu1 %v114_v17, %s830_s0 }
  0xc0   :  { %136 = vrot.lane.b32.xlu2 %v132_v8, %s830_s0  ;;  %202 = vrot.lane.b32.xlu0 %v198_v9, %s833_s21 }
  0xc1   :  { %152 = vrot.lane.b32.xlu1 %v147_v7, %s837_s6 }
  0xc8   :  { %254 = vrot.lane.b32.xlu2 %v250_v10, %s831_s19  ;;  %150 = vrot.lane.b32.xlu0 %v91_v60, %s837_s6 }
  0xd0   :  { %120 = vrot.lane.b32.xlu2 %v115_v11, %s830_s0 }
  0xea   :  { %v378_v22 = vpop.permute.xlu2 %377 }
  0xeb   :  { %v380_v53 = vrot.slane %v378_v22, 4 }
  0xf2   :  { %v362_v23 = vpop.permute.xlu2 %361 }
  0xf3   :  { %v364_v17 = vrot.slane %v362_v23, 4 }
  0xfa   :  { %v441_v25 = vpop.permute.xlu0 %440  ;;  %v1217_v14 = vpop.permute.xlu2 %273 }
  0xfb   :  { %v457_v13 = vpop.permute.xlu1 %456  ;;  %v443_v30 = vrot.slane %v441_v25, 4  ;;  %v276_v22 = vrot.slane %v1217_v14, 4 }
  0xfc   :  { %v459_v28 = vrot.slane %v457_v13, 4  ;;  %v784_v13 = vld [vmem:[#allocation3 + $0x6c] sm:$0xf0] }
 0x102   :  { %v328_v32 = vpop.permute.xlu0 %327  ;;  %v439_v26 = vpop.permute.xlu2 %438 }
 0x103   :  { %v442_v33 = vrot.slane %v439_v26, 4  ;;  %v1219_v34 = vpop.permute.xlu1 %311  ;;  %v330_v31 = vrot.slane %v328_v32, 4  ;;  %v748_v32 = vld [vmem:[#allocation3 + $0x70] sm:$0xf0] }
 0x105   :  { %v444_v35 = vsel %vm124_vm2, %v442_v33, %v443_v30  ;;  %v756_v30 = vld [vmem:[#allocation3 + $0x78] sm:$0xf0]  ;;  %v738_v33 = vld [vmem:[#allocation3 + $0x48] sm:$0xf] }
 0x106   :  { %v445_v37 = vsel %vm98_vm0, %v439_v26, %v444_v35  ;;  %v785_v26 = vld [vmem:[#allocation3 + $0x74] sm:$0xf0] }
 0x107   :  { %v539_v38 = vunpack.c.l.b16 %v445_v37  ;;  %v540_v39 = vunpack.c.h.b16 %v445_v37 }
 0x109   :  { %v559_v40 = vpack.c.b16 %v539_v38, %v539_v38  ;;  %v560_v41 = vpack.c.b16 %v540_v39, %v540_v39 }
 0x10a   :  { %v222_v42 = vpop.permute.xlu0 %221  ;;  %v326_v27 = vpop.permute.xlu2 %325 }
 0x10b   :  { %v329_v36 = vrot.slane %v326_v27, 4  ;;  %v1223_v43 = vpop.permute.xlu1 %204  ;;  %v585_v45 = vsel %vm124_vm2, %v559_v40, 0  ;;  %v588_v46 = vsel %vm124_vm2, %v560_v41, 0  ;;  %v224_v50 = vrot.slane %v222_v42, 4  ;;  %v779_v41 = vld [vmem:[#allocation3 + $0x4c] sm:$0xf] }
 0x10c   :  { %599 = vmatpush.bf16.msra.mxu0 %v585_v45  ;;  %612 = vmatpush.bf16.msra.mxu1 %v588_v46 }
 0x10d   :  { %v331_v48 = vsel %vm124_vm2, %v329_v36, %v330_v31 }
 0x10e   :  { %v332_v49 = vsel %vm1339_vm6, %v326_v27, %v331_v48 }
 0x10f   :  { %334 = vst [vmem:[#allocation3 + $0x58] sm:$0xff] %v332_v49 }
 0x112   :  { %v139_v44 = vpop.permute.xlu0 %138  ;;  %v220_v47 = vpop.permute.xlu2 %219 }
 0x113   :  { %v223_v51 = vrot.slane %v220_v47, 4  ;;  %v376_v52 = vpop.permute.xlu1 %375  ;;  %v141_v29 = vrot.slane %v139_v44, 4 }
 0x114   :  { %v379_v54 = vrot.slane %v376_v52, 4 }
 0x115   :  { %v225_v55 = vsel %vm124_vm2, %v223_v51, %v224_v50 }
 0x116   :  { %v226_v56 = vsel %vm1340_vm7, %v220_v47, %v225_v55  ;;  %v381_v57 = vsel %vm124_vm2, %v379_v54, %v380_v53  ;;  %v781_v40 = vld [vmem:[#allocation3 + $0x54] sm:$0xf0]  ;;  %v740_v42 = vld [vmem:[#allocation3 + $0x58] sm:$0xf0]  ;;  %v314_v47 = vrot.slane %v1219_v34, 4 }
 0x117   :  { %228 = vst [vmem:[#allocation3 + $0x28] sm:$0xff] %v226_v56  ;;  %v382_v21 = vsel %vm1341_vm12, %v376_v52, %v381_v57  ;;  %v739_v49 = vor.u32 %v781_v40, %v738_v33  ;;  %v743_v44 = vor.u32 %v779_v41, %v740_v42  ;;  %v483_v54 = vld [vmem:[%s1292_s2] sm:$0xff] }
 0x118   :  { %384 = vst [vmem:[#allocation3 + $0x68] sm:$0xff] %v382_v21  ;;  %486 = vperm.xlu2 %798, %v483_v54  }
 0x11a   :  { %v455_v58 = vpop.permute.xlu0 %454  ;;  %v137_v59 = vpop.permute.xlu2 %136 }
 0x11b   :  { %v458_v60 = vrot.slane %v455_v58, 4  ;;  %v360_v61 = vpop.permute.xlu1 %359  ;;  %v140_v62 = vrot.slane %v137_v59, 4 }
 0x11c   :  { %v363_v63 = vrot.slane %v360_v61, 4 }
 0x11d   :  { %v460_v0 = vsel %vm124_vm2, %v458_v60, %v459_v28  ;;  %v142_v1 = vsel %vm124_vm2, %v140_v62, %v141_v29 }
 0x11e   :  { %v461_v2 = vsel %vm98_vm0, %v455_v58, %v460_v0  ;;  %v365_v3 = vsel %vm124_vm2, %v363_v63, %v364_v17  ;;  %v143_v4 = vsel %vm1342_vm15, %v137_v59, %v142_v1  ;;  %vm1344_vm0 = vcmask 7168   ;;  %v722_v21 = vld [vmem:[#allocation3 + $0x28] sm:$0xf]  ;;  %v775_v58 = vld [vmem:[#allocation3 + $0x2c] sm:$0xf] }
 0x11f   :  { %v366_v5 = vsel %vm1343_vm1, %v360_v61, %v365_v3  ;;  %v541_v6 = vunpack.c.l.b16 %v461_v2  ;;  %v542_v7 = vunpack.c.h.b16 %v461_v2  ;;  %145 = vst [vmem:[#allocation3 + $0x8] sm:$0xff] %v143_v4  ;;  %v754_v11 = vld [vmem:[#allocation3 + $0x68] sm:$0xf]  ;;  %v783_v20 = vld [vmem:[#allocation3 + $0x6c] sm:$0xf]  ;;  %vm1345_vm4 = vmmov %vm1344_vm0  ;;  %v207_v63 = vrot.slane %v1223_v43, 4 }
 0x120   :  { %368 = vst [vmem:[#allocation3 + $0x60] sm:$0xff] %v366_v5  ;;  %v755_v38 = vor.u32 %v785_v26, %v754_v11  ;;  %v759_v39 = vor.u32 %v783_v20, %v756_v30  ;;  %v773_v1 = vld [vmem:[#allocation3 + $0x14] sm:$0xf0]  ;;  %v708_v2 = vld [vmem:[#allocation3 + $0x18] sm:$0xf0] }
 0x121   :  { %v561_v8 = vpack.c.b16 %v541_v6, %v541_v6  ;;  %v562_v9 = vpack.c.b16 %v542_v7, %v542_v7  ;;  %v730_v3 = vld [vmem:[#allocation3 + $0x40] sm:$0xf]  ;;  %v778_v4 = vld [vmem:[#allocation3 + $0x44] sm:$0xf]  ;;  %v464_v43 = vld [vmem:[%s1291_s1] sm:$0xf] }
 0x122   :  { %v257_v10 = vpop.permute.xlu0 %256  ;;  %v255_v24 = vpop.permute.xlu2 %254 }
 0x123   :  { %v259_v12 = vrot.slane %v257_v10, 4  ;;  %v272_v15 = vpop.permute.xlu1 %271  ;;  %v258_v16 = vrot.slane %v255_v24, 4  ;;  %v591_v18 = vsel %vm124_vm2, %v561_v8, 0  ;;  %v594_v19 = vsel %vm124_vm2, %v562_v9, 0 }
 0x124   :  { %v275_v23 = vrot.slane %v272_v15, 4  ;;  %625 = vmatpush.bf16.msra.mxu2 %v591_v18  ;;  %638 = vmatpush.bf16.msra.mxu3 %v594_v19 }
 0x125   :  { %v260_v25 = vsel %vm124_vm2, %v258_v16, %v259_v12 }
 0x126   :  { %v277_v35 = vsel %vm124_vm2, %v275_v23, %v276_v22  ;;  %v262_v37 = vsel %vm1344_vm0, %v255_v24, %v260_v25  ;;  %v706_v61 = vld [vmem:[#allocation3 + $0x8] sm:$0xf]  ;;  %v771_v62 = vld [vmem:[#allocation3 + $0xc] sm:$0xf] }
 0x127   :  { %v278_v14 = vsel %vm1345_vm4, %v272_v15, %v277_v35  ;;  %264 = vst [vmem:[#allocation3 + $0x30] sm:$0xff] %v262_v37  ;;  %v746_v27 = vld [vmem:[#allocation3 + $0x60] sm:$0xf]  ;;  %v782_v31 = vld [vmem:[#allocation3 + $0x64] sm:$0xf]  ;;  %v707_v5 = vor.u32 %v773_v1, %v706_v61  ;;  %v711_v6 = vor.u32 %v771_v62, %v708_v2 }
 0x128   :  { %280 = vst [vmem:[#allocation3 + $0x38] sm:$0xff] %v278_v14  ;;  %v747_v36 = vor.u32 %v784_v13, %v746_v27  ;;  %v751_v45 = vor.u32 %v782_v31, %v748_v32  ;;  %626 = vmatpush.bf16.msra.mxu2 %v755_v38  ;;  %639 = vmatpush.bf16.msra.mxu3 %v759_v39 }
 0x12a   :  { %600 = vmatpush.bf16.msra.mxu0 %v747_v36  ;;  %613 = vmatpush.bf16.msra.mxu1 %v751_v45  ;;  %v310_v46 = vpop.permute.xlu0 %309  ;;  %v121_v48 = vpop.permute.xlu2 %120 }
 0x12b   :  { %v313_v50 = vrot.slane %v310_v46, 4  ;;  %v123_v51 = vrot.slane %v121_v48, 4  ;;  %v119_v52 = vpop.permute.xlu1 %118 }
 0x12c   :  { %v122_v53 = vrot.slane %v119_v52, 4  ;;  %627 = vmatpush.bf16.msra.mxu2 %v739_v49  ;;  %640 = vmatpush.bf16.msra.mxu3 %v743_v44 }
 0x12d   :  { %v315_v55 = vsel %vm124_vm2, %v313_v50, %v314_v47 }
 0x12e   :  { %v316_v56 = vsel %vm1346_vm8, %v310_v46, %v315_v55  ;;  %v125_v57 = vsel %vm124_vm2, %v122_v53, %v123_v51  ;;  %v776_v20 = vld [vmem:[#allocation3 + $0x2c] sm:$0xf0]  ;;  %v716_v13 = vld [vmem:[#allocation3 + $0x30] sm:$0xf0] }
 0x12f   :  { %318 = vst [vmem:[#allocation3 + $0x50] sm:$0xff] %v316_v56  ;;  %v127_v34 = vsel %vm1347_vm9, %v119_v52, %v125_v57  ;;  %v777_v59 = vld [vmem:[#allocation3 + $0x34] sm:$0xf0]  ;;  %v724_v28 = vld [vmem:[#allocation3 + $0x38] sm:$0xf0] }
 0x130   :  { %129 = vst [vmem:[#allocation3] sm:$0xff] %v127_v34  ;;  %v723_v29 = vor.u32 %v777_v59, %v722_v21  ;;  %v727_v60 = vor.u32 %v775_v58, %v724_v28 }
 0x132   :  { %v203_v17 = vpop.permute.xlu0 %202  ;;  %628 = vmatpush.bf16.msra.mxu2 %v723_v29  ;;  %641 = vmatpush.bf16.msra.mxu3 %v727_v60 }
 0x133   :  { %v206_v0 = vrot.slane %v203_v17, 4  ;;  %v153_v24 = vpop.permute.xlu1 %152 }
 0x134   :  { %v155_v15 = vrot.slane %v153_v24, 4 }
 0x135   :  { %v208_v7 = vsel %vm124_vm2, %v206_v0, %v207_v63 }
 0x136   :  { %v210_v8 = vsel %vm1348_vm13, %v203_v17, %v208_v7  ;;  %v780_v9 = vld [vmem:[#allocation3 + $0x4c] sm:$0xf0]  ;;  %v732_v10 = vld [vmem:[#allocation3 + $0x50] sm:$0xf0]  ;;  %629 = vmatpush.bf16.msra.mxu2 %v707_v5  ;;  %642 = vmatpush.bf16.msra.mxu3 %v711_v6 }
 0x137   :  { %212 = vst [vmem:[#allocation3 + $0x20] sm:$0xff] %v210_v8  ;;  %v731_v11 = vor.u32 %v780_v9, %v730_v3  ;;  %v735_v12 = vor.u32 %v778_v4, %v732_v10  ;;  %v698_v30 = vld [vmem:[#allocation3] sm:$0xf]  ;;  %v770_v35 = vld [vmem:[#allocation3 + $0x4] sm:$0xf] }
 0x139   :  { %601 = vmatpush.bf16.msra.mxu0 %v731_v11  ;;  %614 = vmatpush.bf16.msra.mxu1 %v735_v12 }
 0x13a   :  { %v151_v16 = vpop.permute.xlu0 %150  ;;  %762 = vmatmul.msk.bf16.vlgmr.msra.gmra.mxu2 %vm579_vm10, %v464_v43  ;;  %763 = vmatmul.msk.bf16.vlgmr.msra.gmra.mxu3 %vm579_vm10, %v464_v43 }
 0x13b   :  { %v154_v18 = vrot.slane %v151_v16, 4 }
 0x13d   :  { %v156_v19 = vsel %vm124_vm2, %v154_v18, %v155_v15 }
 0x13e   :  { %v158_v22 = vsel %vm157_vm5, %v151_v16, %v156_v19  ;;  %v714_v23 = vld [vmem:[#allocation3 + $0x20] sm:$0xf]  ;;  %v774_v25 = vld [vmem:[#allocation3 + $0x24] sm:$0xf] }
 0x13f   :  { %160 = vst [vmem:[#allocation3 + $0x10] sm:$0xff] %v158_v22  ;;  %v715_v32 = vor.u32 %v776_v20, %v714_v23  ;;  %v719_v26 = vor.u32 %v774_v25, %v716_v13 }
 0x141   :  { %602 = vmatpush.bf16.msra.mxu0 %v715_v32  ;;  %615 = vmatpush.bf16.msra.mxu1 %v719_v26 }
 0x146   :  { %v772_v33 = vld [vmem:[#allocation3 + $0xc] sm:$0xf0]  ;;  %v700_v37 = vld [vmem:[#allocation3 + $0x10] sm:$0xf0] }
 0x147   :  { %v699_v38 = vor.u32 %v772_v33, %v698_v30  ;;  %v703_v39 = vor.u32 %v770_v35, %v700_v37 }
 0x149   :  { %603 = vmatpush.bf16.msra.mxu0 %v699_v38  ;;  %616 = vmatpush.bf16.msra.mxu1 %v703_v39 }
 0x14c   :  { %760 = vmatmul.msk.bf16.vlgmr.msra.gmra.mxu0 %vm579_vm10, %v464_v43  ;;  %761 = vmatmul.msk.bf16.vlgmr.msra.gmra.mxu1 %vm579_vm10, %v464_v43 }
 0x172   :  { %v487_v40 = vpop.permute.xlu2 %486 }
 0x1bd   :  { %v631_v41 = vpop.f32.mrf.mxu2  ;;  %v644_v42 = vpop.f32.mrf.mxu3 }
 0x1be   :  { %v632_v14 = vadd.f32 %v631_v41, %v487_v40  ;;  %v645_v27 = vadd.f32 %v644_v42, %v487_v40 }
 0x1c0   :  { %v650_v31 = vmax.f32 %v632_v14, 0.0  ;;  %v651_v36 = vmax.f32 %v645_v27, 0.0 }
 0x1c2   :  { %v683_v45 = vrot.slane %v650_v31, 4  ;;  %v684_v46 = vrot.slane %v651_v36, 4 }
 0x1c4   :  { %766 = vst [vmem:[%s1293_s3 + $0x20] sm:$0xf0] %v683_v45 }
 0x1c5   :  { %767 = vst [vmem:[%s1293_s3 + $0x28] sm:$0xf0] %v684_v46  ;;  %v633_v48 = vpop.f32.mrf.mxu2  ;;  %v646_v49 = vpop.f32.mrf.mxu3 }
 0x1c6   :  { %768 = vst [vmem:[%s1293_s3 + $0x30] sm:$0xf] %v683_v45 }
 0x1c7   :  { %769 = vst [vmem:[%s1293_s3 + $0x38] sm:$0xf] %v684_v46 }
 0x1c9   :  { %v605_v44 = vpop.f32.mrf.mxu0  ;;  %v618_v47 = vpop.f32.mrf.mxu1 }
 0x1ca   :  { %v606_v50 = vadd.f32 %v605_v44, %v487_v40  ;;  %v619_v51 = vadd.f32 %v618_v47, %v487_v40 }
 0x1cc   :  { %v648_v52 = vmax.f32 %v606_v50, 0.0  ;;  %v649_v53 = vmax.f32 %v619_v51, 0.0 }
 0x1ce   :  { %v663_v54 = vrot.slane %v648_v52, 4  ;;  %v664_v55 = vrot.slane %v649_v53, 4 }
 0x1d0   :  { %667 = vst [vmem:[%s1293_s3] sm:$0xf0] %v663_v54 }
 0x1d1   :  { %669 = vst [vmem:[%s1293_s3 + $0x10] sm:$0xf] %v663_v54  ;;  %v607_v56 = vpop.f32.mrf.mxu0  ;;  %v620_v57 = vpop.f32.mrf.mxu1 }
 0x1d2   :  { %668 = vst [vmem:[%s1293_s3 + $0x8] sm:$0xf0] %v664_v55 }
 0x1d3   :  { %670 = vst [vmem:[%s1293_s3 + $0x18] sm:$0xf] %v664_v55 }
 0x1d4   :  { %695 = vsyncpa [#allocation5], 1 }

</bundles_post_ra>
